<compile_context>
chip_gen: v7x
topology: tpu7x:2x2x1
jax: 0.10.0
libtpu: 0.0.40
codegen_flags: <defaults>
</compile_context>

<pallas_src>
import functools

import jax
import jax.numpy as jnp
from jax.experimental import pallas as pl
from jax.experimental.pallas import tpu as pltpu


def _attention_kernel(x_ref, w_ref, b_ref, o_ref, *, h_pad):
    x = x_ref[...]                                               # (tb, D_in) f32

    # Single fused QKV projection on the MXU: (tb, D_in) @ (D_in, 3*H_pad).
    qkv = jnp.dot(x, w_ref[...], preferred_element_type=jnp.float32) + b_ref[...]

    # Static, 128-aligned lane splits (no tile-crossing copies).
    q = qkv[:, 0 * h_pad:1 * h_pad]   # pre-scaled by 1/hidden_dims; pad lanes == 1.0
    k = qkv[:, 1 * h_pad:2 * h_pad]   # pad lanes == -1e30 (mask folded into bias)
    v = qkv[:, 2 * h_pad:3 * h_pad]   # pad lanes == 0.0

    # Elementwise score; padded lanes become -1e30 so exp() underflows to 0
    # and the softmax denominator only sees the real hidden columns.
    score = k * q
    m = jnp.max(score, axis=-1, keepdims=True)
    e = jnp.exp(score - m)
    denom = jnp.sum(e, axis=-1, keepdims=True)
    p = e * pl.reciprocal(denom, approx=False)       # EUP path, off the VPU slots

    o_ref[...] = (v * p).astype(o_ref.dtype)


def _round_up(v, m):
    return ((v + m - 1) // m) * m


def attention_forward(x, wq, bq, wk, bk, wv, bv, *, hidden_dims,
                      tile_b=1024, trim_output=True):
    """x: (B, input_dims) f32.  wq/wk/wv: (hidden, input) (PyTorch layout),
    bq/bk/bv: (hidden,).

    Returns (B, hidden_dims) f32 if trim_output else the lane-padded
    (B, round_up(hidden_dims, 128)) buffer (avoids a post-kernel HBM copy)."""
    B, D_in = x.shape
    H = hidden_dims
    H_pad = _round_up(H, 128)
    f32 = jnp.float32

    # ---- static weight prep (done once; free) --------------------------------
    # Fold the 1/hidden_dims scale into the Q projection (weights + bias), and
    # fold the softmax pad mask into the padded-lane biases:
    #   q_pad = 1.0, k_pad = -1e30  ->  score_pad = -1e30  (exp -> 0)
    #   v_pad = 0.0                 ->  output 0 on padded lanes.
    wq_s = (wq / H).astype(f32)
    bq_s = (bq / H).astype(f32)

    def pad_proj(w, b, pad_bias):
        w_t = jnp.zeros((D_in, H_pad), f32).at[:, :H].set(w.T.astype(f32))
        b_p = jnp.full((1, H_pad), pad_bias, f32).at[:, :H].set(b.astype(f32))
        return w_t, b_p

    wq_t, bq_p = pad_proj(wq_s, bq_s, 1.0)
    wk_t, bk_p = pad_proj(wk, bk, -1e30)
    wv_t, bv_p = pad_proj(wv, bv, 0.0)

    w_qkv = jnp.concatenate([wq_t, wk_t, wv_t], axis=1)          # (D_in, 3*H_pad)
    b_qkv = jnp.concatenate([bq_p, bk_p, bv_p], axis=1)          # (1, 3*H_pad)

    # ---- batch tiling (no explicit padding of X; Pallas masks the ragged tail)
    if B <= 8:
        tb = B                                   # block == full dim is allowed
    else:
        tb = min(tile_b, _round_up(B, 8))        # sublane (8) aligned
        if pl.cdiv(B, tb) < 2:
            # Guarantee >= 2 grid steps so the parallel batch axis can shard
            # across both v7x TensorCores (no effect on v5e/v6e single-TC).
            tb = _round_up(pl.cdiv(B, 2), 8)
    grid = (pl.cdiv(B, tb),)

    x_f32 = x.astype(f32)
    kernel = functools.partial(_attention_kernel, h_pad=H_pad)

    # Rough in-kernel VMEM footprint: double-buffered X/O tiles + resident
    # weights/bias + qkv/score/e/p temps.  Only raise the scoped limit if a
    # user-requested tile would overshoot v5e's 16 MiB default; cap at 48 MiB
    # to stay inside v7x's 64 MiB physical VMEM.
    vmem_est = 4 * (2 * tb * D_in + 2 * tb * H_pad
                    + 2 * D_in * 3 * H_pad + 2 * 3 * H_pad
                    + tb * 3 * H_pad + 4 * tb * H_pad)
    cp_kwargs = dict(dimension_semantics=("parallel",))          # megacore-shardable
    if vmem_est > (12 << 20):
        cp_kwargs["vmem_limit_bytes"] = min(int(vmem_est * 1.5), 48 << 20)

    cost = pl.CostEstimate(
        flops=2 * B * D_in * 3 * H_pad,
        transcendentals=B * H_pad,
        bytes_accessed=4 * (B * D_in + B * H_pad + D_in * 3 * H_pad + 3 * H_pad),
    )

    out = pl.pallas_call(
        kernel,
        out_shape=jax.ShapeDtypeStruct((B, H_pad), f32),
        grid_spec=pltpu.PrefetchScalarGridSpec(
            num_scalar_prefetch=0,
            grid=grid,
            in_specs=[
                pl.BlockSpec((tb, D_in), lambda i: (i, 0)),          # X tiles
                pl.BlockSpec((D_in, 3 * H_pad), lambda i: (0, 0)),   # fused W (resident)
                pl.BlockSpec((1, 3 * H_pad), lambda i: (0, 0)),      # fused bias (+mask)
            ],
            out_specs=pl.BlockSpec((tb, H_pad), lambda i: (i, 0)),   # lane-dense (128)
        ),
        compiler_params=pltpu.CompilerParams(**cp_kwargs),
        cost_estimate=cost,
    )(x_f32, w_qkv, b_qkv)

    if trim_output:
        return out[:, :H]     # TODO(synk): consumers should fuse/keep the padded
                              # buffer (trim_output=False) to skip this HBM copy.
    return out


def _torch_like_linear_init(key, out_features, in_features):
    """Deterministic init mimicking nn.Linear's uniform(-1/sqrt(in), 1/sqrt(in))."""
    kw, kb = jax.random.split(key)
    bound = 1.0 / jnp.sqrt(jnp.float32(in_features))
    w = jax.random.uniform(kw, (out_features, in_features), jnp.float32, -bound, bound)
    b = jax.random.uniform(kb, (out_features,), jnp.float32, -bound, bound)
    return w, b


def _reference(x, wq, bq, wk, bk, wv, bv, hidden_dims):
    q = x @ wq.T + bq
    k = x @ wk.T + bk
    v = x @ wv.T + bv
    score = k * q / hidden_dims
    p = jax.nn.softmax(score, axis=1)
    return v * p


if __name__ == "__main__":
    B, INPUT_DIMS, HIDDEN_DIMS = 8, 32, 100

    key = jax.random.PRNGKey(0)
    kx, kq, kk, kv, kx2 = jax.random.split(key, 5)

    x = jax.random.normal(kx, (B, INPUT_DIMS), jnp.float32)
    wq, bq = _torch_like_linear_init(kq, HIDDEN_DIMS, INPUT_DIMS)
    wk, bk = _torch_like_linear_init(kk, HIDDEN_DIMS, INPUT_DIMS)
    wv, bv = _torch_like_linear_init(kv, HIDDEN_DIMS, INPUT_DIMS)

    # Small check (single grid step, tb == B).
    out = attention_forward(x, wq, bq, wk, bk, wv, bv, hidden_dims=HIDDEN_DIMS)
    out = jax.block_until_ready(out)
    ref = _reference(x, wq, bq, wk, bk, wv, bv, HIDDEN_DIMS)
    assert out.shape == (B, HIDDEN_DIMS)
    assert jnp.allclose(out, ref, atol=5e-3, rtol=5e-3), "mismatch vs JAX reference (small)"

    # Larger check: exercises the multi-step batch grid + ragged tail block
    # (no explicit padding of X) and the >=2-step v7x split.
    B2 = 600
    x2 = jax.random.normal(kx2, (B2, INPUT_DIMS), jnp.float32)
    out2 = attention_forward(x2, wq, bq, wk, bk, wv, bv, hidden_dims=HIDDEN_DIMS)
    out2 = jax.block_until_ready(out2)
    ref2 = _reference(x2, wq, bq, wk, bk, wv, bv, HIDDEN_DIMS)
    assert out2.shape == (B2, HIDDEN_DIMS)
    assert jnp.allclose(out2, ref2, atol=5e-3, rtol=5e-3), "mismatch vs JAX reference (grid)"
    assert bool(jnp.all(jnp.isfinite(out2))), "NaN/Inf leaked from ragged tail block"

    print("KERNEL_OK")
</pallas_src>

<mosaic_0001>
module attributes {stable_mosaic.version = 11 : i64} {
  func.func @_attention_kernel(%arg0: i32, %arg1: memref<8x32xf32, #tpu.memory_space<vmem>>, %arg2: memref<32x384xf32, #tpu.memory_space<vmem>>, %arg3: memref<1x384xf32, #tpu.memory_space<vmem>>, %arg4: memref<8x128xf32, #tpu.memory_space<vmem>>) attributes {dimension_semantics = [#tpu.dimension_semantics<parallel>], iteration_bounds = array<i64: 1>, scalar_prefetch = 0 : i64, scratch_operands = 0 : i64, tpu.core_type = #tpu.core_type<tc>, window_params = [{transform_indices = @transform_0, window_bounds = array<i64: 8, 32>}, {pipeline_mode = #tpu.pipeline_mode<synchronous>, transform_indices = @transform_1, window_bounds = array<i64: 32, 384>}, {pipeline_mode = #tpu.pipeline_mode<synchronous>, transform_indices = @transform_2, window_bounds = array<i64: 1, 384>}, {transform_indices = @transform_3, window_bounds = array<i64: 8, 128>}]} {
    %c0 = arith.constant 0 : index
    %c0_0 = arith.constant 0 : index
    %0 = vector.load %arg1[%c0, %c0_0] : memref<8x32xf32, #tpu.memory_space<vmem>>, vector<8x32xf32>
    %c0_1 = arith.constant 0 : index
    %c0_2 = arith.constant 0 : index
    %1 = vector.load %arg2[%c0_1, %c0_2] : memref<32x384xf32, #tpu.memory_space<vmem>>, vector<32x384xf32>
    %cst = arith.constant dense<0.000000e+00> : vector<8x384xf32>
    %2 = tpu.matmul %0, %1, %cst {dimension_numbers = #tpu.dot_dimension_numbers<[1], [0], [0], [1], [0, 0, 1, 1], [], []>} : vector<8x32xf32>, vector<32x384xf32>, vector<8x384xf32> -> vector<8x384xf32>
    %c0_3 = arith.constant 0 : index
    %c0_4 = arith.constant 0 : index
    %3 = vector.load %arg3[%c0_3, %c0_4] : memref<1x384xf32, #tpu.memory_space<vmem>>, vector<1x384xf32>
    %4 = vector.broadcast %3 : vector<1x384xf32> to vector<8x384xf32>
    %5 = arith.addf %2, %4 : vector<8x384xf32>
    %6 = vector.extract_strided_slice %5 {offsets = [0, 0], sizes = [8, 128], strides = [1, 1]} : vector<8x384xf32> to vector<8x128xf32>
    %7 = vector.extract_strided_slice %5 {offsets = [0, 128], sizes = [8, 128], strides = [1, 1]} : vector<8x384xf32> to vector<8x128xf32>
    %8 = vector.extract_strided_slice %5 {offsets = [0, 256], sizes = [8, 128], strides = [1, 1]} : vector<8x384xf32> to vector<8x128xf32>
    %9 = arith.mulf %7, %6 : vector<8x128xf32>
    %cst_5 = arith.constant dense<0xFF800000> : vector<8xf32>
    %10 = vector.multi_reduction <maximumf>, %9, %cst_5 [1] : vector<8x128xf32> to vector<8xf32>
    %11 = vector.shape_cast %10 : vector<8xf32> to vector<8x1xf32>
    %12 = vector.broadcast %11 : vector<8x1xf32> to vector<8x128xf32>
    %13 = arith.subf %9, %12 : vector<8x128xf32>
    %14 = math.exp %13 : vector<8x128xf32>
    %cst_6 = arith.constant dense<0.000000e+00> : vector<8xf32>
    %15 = vector.multi_reduction <add>, %14, %cst_6 [1] : vector<8x128xf32> to vector<8xf32>
    %16 = vector.shape_cast %15 : vector<8xf32> to vector<8x1xf32>
    %17 = tpu.reciprocal %16 : vector<8x1xf32> -> vector<8x1xf32>
    %18 = vector.broadcast %17 : vector<8x1xf32> to vector<8x128xf32>
    %19 = arith.mulf %14, %18 : vector<8x128xf32>
    %20 = arith.mulf %8, %19 : vector<8x128xf32>
    %c0_7 = arith.constant 0 : index
    %c0_8 = arith.constant 0 : index
    %21 = vector.load %arg4[%c0_7, %c0_8] : memref<8x128xf32, #tpu.memory_space<vmem>>, vector<8x128xf32>
    tpu.vector_store %arg4[%c0_7, %c0_8], %20 {strides = array<i32>} : memref<8x128xf32, #tpu.memory_space<vmem>>, vector<8x128xf32>,
    return
  }
  func.func @transform_0(%arg0: i32) -> (i32, i32) {
    %c0_i32 = arith.constant 0 : i32
    %c0_i32_0 = arith.constant 0 : i32
    return %arg0, %c0_i32 : i32, i32
  }
  func.func @transform_1(%arg0: i32) -> (i32, i32) {
    %c0_i32 = arith.constant 0 : i32
    %c0_i32_0 = arith.constant 0 : i32
    %c0_i32_1 = arith.constant 0 : i32
    return %c0_i32, %c0_i32_0 : i32, i32
  }
  func.func @transform_2(%arg0: i32) -> (i32, i32) {
    %c0_i32 = arith.constant 0 : i32
    %c0_i32_0 = arith.constant 0 : i32
    %c0_i32_1 = arith.constant 0 : i32
    return %c0_i32, %c0_i32_0 : i32, i32
  }
  func.func @transform_3(%arg0: i32) -> (i32, i32) {
    %c0_i32 = arith.constant 0 : i32
    %c0_i32_0 = arith.constant 0 : i32
    return %arg0, %c0_i32 : i32, i32
  }
}

</mosaic_0001>

<bundles_post_ra>
// kernel: tpu_custom_call.1
= control target key start
LH: loop header
LB: loop body
LE: loop exit
PB: predicated region body
PF: predicated region fallthrough
CT: control target
= control target key end

     0   :  { %8 = vsyncpa [#allocation3], 0  ;;  %s434_s0 = inlined_call_operand.hbm [shape: f32[8,32], index: 0, kind: input, shape index: {}]   ;;  %s435_s1 = inlined_call_operand.hbm [shape: f32[32,384], index: 1, kind: input, shape index: {}]   ;;  %s436_s2 = inlined_call_operand.vmem [shape: f32[1,384], index: 2, kind: input, shape index: {}]   ;;  %s437_s3 = inlined_call_operand.hbm [shape: f32[8,128], index: 3, kind: output, shape index: {}]  }
   0x1   :  { %9 = vsyncpa [#allocation6], 0 }
   0x2   :  { %10 = vsyncpa [#allocation4], 0  ;;  %s360_s12 = smov [#allocation2]   ;;  %s361_s14 = smov [#allocation5]  }
   0x3   :  { %s17_s13 = sshll.u32 %s360_s12, 4  ;;  %s26_s15 = sshll.u32 %s361_s14, 4  ;;  %s18_s13 = int_to_ptr.vmem [resolvable:$true] %s17_s13  ;;  %s388_s15 = int_to_ptr.vmem [resolvable:$true] %s26_s15 }
   0x4   :  { %s288_s18 = scalar_lea.hbm %s434_s0, 128 }
   0x5   :  { %p289_p0 = scmp.ne.s32.totalorder %s434_s0, %s288_s18  ;;  %p292_p1 = scmp.lt.u32.totalorder %s288_s18, %s434_s0 }
   0x7   :  { %p294_p2 = pnand %p292_p1, %p289_p0 }
   0x9   :  { %297 = shalt.err (!%p294_p2)
}
   0xa   :  { %s298_s23 = scalar_lea.vmem %s18_s13, 128  ;;  %p303_p4 = scmp.lt.s32.totalorder %s18_s13, %s18_s13 }
   0xb   :  { %p299_p3 = scmp.ne.s32.totalorder %s18_s13, %s298_s23  ;;  %p304_p5 = scmp.lt.s32.totalorder %s298_s23, %s298_s23 }
   0xd   :  { %p305_p6 = por %p304_p5, %p303_p4 }
   0xf   :  { %p306_p7 = pnand %p305_p6, %p299_p3 }
  0x11   :  { %309 = shalt.err (!%p306_p7)
}
  0x12   :  { %20 = dma.hbm_to_vmem [thread:$0]  %s434_s0, 128, %s18_s13, [#allocation3]  }
  0x13   :  { %s310_s28 = scalar_lea.hbm %s435_s1, 1536 }
  0x14   :  { %p311_p8 = scmp.ne.s32.totalorder %s435_s1, %s310_s28  ;;  %p314_p9 = scmp.lt.u32.totalorder %s310_s28, %s435_s1 }
  0x16   :  { %p316_p10 = pnand %p314_p9, %p311_p8 }
  0x18   :  { %319 = shalt.err (!%p316_p10)
}
  0x19   :  { %s320_s6 = scalar_lea.vmem %s388_s15, 1536  ;;  %p325_p12 = scmp.lt.s32.totalorder %s388_s15, %s388_s15 }
  0x1a   :  { %p321_p11 = scmp.ne.s32.totalorder %s388_s15, %s320_s6  ;;  %p326_p13 = scmp.lt.s32.totalorder %s320_s6, %s320_s6 }
  0x1c   :  { %p327_p0 = por %p326_p13, %p325_p12 }
  0x1e   :  { %p328_p1 = pnand %p327_p0, %p321_p11 }
  0x20   :  { %331 = shalt.err (!%p328_p1)
}
  0x21   :  { %s362_s0 = smov 384   ;;  %s363_s7 = smov 24  }
  0x22   :  { %32 = dma.hbm_to_vmem [thread:$0]  %s435_s1, 1536, %s388_s15, [#allocation6], %s362_s0, %s362_s0, %s363_s7  }
  0x23   :  { %354 = dma.done.wait [#allocation3], 128  }
  0x24   :  { %355 = vsyncadd [#allocation3], 4294967168 }
  0x25   :  { %356 = dma.done.wait [#allocation6], 1536  }
  0x26   :  { %357 = vsyncadd [#allocation6], 4294965760  ;;  %v364_v0 = vmov 0.0   ;;  %v43_v1 = vld [vmem:[#allocation5 + $0x8] sm:$0xff]  ;;  %v46_v2 = vld [vmem:[#allocation5 + $0x20] sm:$0xff]  ;;  %vm71_vm0 = vcmask 261120   ;;  %v56_v21 = vlaneseq }
  0x27   :  { %139 = vmatprep.mubr.f32.mxu0 %v364_v0  ;;  %v42_v3 = vld [vmem:[#allocation5] sm:$0xff]  ;;  %v262_v4 = vpack.c.bf16 %v46_v2, %v43_v1  ;;  %v45_v5 = vld [vmem:[#allocation5 + $0x18] sm:$0xff]  ;;  %v52_v7 = vld [vmem:[#allocation5 + $0x50] sm:$0xff]  ;;  %v365_v17 = vmov 0.0|0.0   ;;  %vm366_vm1 = vmmov 0  }
  0x28   :  { %v49_v6 = vld [vmem:[#allocation5 + $0x38] sm:$0xff]  ;;  %v264_v8 = vpack.c.bf16 %v45_v5, %v42_v3  ;;  %v48_v10 = vld [vmem:[#allocation5 + $0x30] sm:$0xff]  ;;  %v51_v11 = vld [vmem:[#allocation5 + $0x48] sm:$0xff]  ;;  %270 = vmatprep.subr.bf16.mxu1 %v365_v17  ;;  %259 = vmatprep.mubr.msk.f32.mxu1 %vm366_vm1, %v364_v0  ;;  %v57_v22 = vshrl.u32 %v56_v21, 7 }
  0x29   :  { %v266_v9 = vpack.c.bf16 %v52_v7, %v49_v6  ;;  %263 = vmatprep.subr.bf16.mxu0 %v262_v4  ;;  %v268_v12 = vpack.c.bf16 %v51_v11, %v48_v10  ;;  %v41_v13 = vld [vmem:[#allocation2] sm:$0xff]  ;;  %v44_v14 = vld [vmem:[#allocation5 + $0x10] sm:$0xff]  ;;  %v47_v15 = vld [vmem:[#allocation5 + $0x28] sm:$0xff] }
  0x2a   :  { %265 = vmatpush1.bf16.msra.mxu0 %v264_v8  ;;  %v50_v16 = vld [vmem:[#allocation5 + $0x40] sm:$0xff]  ;;  %v271_v18 = vpack.c.bf16 %v47_v15, %v44_v14  ;;  %v53_v19 = vld [vmem:[#allocation5 + $0x58] sm:$0xff]  ;;  %v58_v23 = vsub.s32 0, %v57_v22  ;;  %v62_v25 = vsub.s32 1, %v57_v22  ;;  %v66_v40 = vsub.s32 2, %v57_v22 }
  0x2b   :  { %267 = vmatprep.subr.bf16.mxu0 %v266_v9  ;;  %v274_v20 = vpack.c.bf16 %v53_v19, %v50_v16  ;;  %v54_v24 = vld [vmem:[%s436_s2] sm:$0x7]  ;;  %s367_s2 = smov [#allocation7]  }
  0x2c   :  { %272 = vmatpush3.bf16.msra.mxu1 %v271_v18  ;;  %v59_v26 = vrot.slane %v54_v24, %v58_v23  ;;  %v63_v27 = vrot.slane %v54_v24, %v62_v25  ;;  %v67_v41 = vrot.slane %v54_v24, %v66_v40  ;;  %s234_s11 = sshll.u32 %s367_s2, 4  ;;  %s235_s11 = int_to_ptr.vmem [resolvable:$true] %s234_s11 }
  0x2d   :  { %273 = vmatprep.subr.bf16.mxu1 %v365_v17  ;;  %s332_s12 = scalar_lea.vmem %s235_s11, 128  ;;  %p337_p3 = scmp.lt.s32.totalorder %s235_s11, %s235_s11 }
  0x2e   :  { %269 = vmatpush1.bf16.msra.mxu0 %v268_v12  ;;  %p333_p2 = scmp.ne.s32.totalorder %s235_s11, %s332_s12  ;;  %p338_p4 = scmp.lt.s32.totalorder %s332_s12, %s332_s12 }
  0x30   :  { %275 = vmatpush3.bf16.msra.mxu1 %v274_v20  ;;  %p339_p5 = por %p338_p4, %p337_p3 }
  0x31   :  { %244 = vmatmul.mubr.msk.f32.vlgmr.msra.gmra.mrb[0].mxu0 %vm71_vm0, %v41_v13 }
  0x32   :  { %p340_p6 = pnand %p339_p5, %p333_p2 }
  0x33   :  { %260 = vmatmul.mubr.msk.f32.vlgmr.msra.gmra.mrb[0].mxu1 %vm71_vm0, %v41_v13 }
 0x104   :  { %v141_v28 = vpop.f32.mrb[0].mxu0 }
 0x105   :  { %v142_v29 = vadd.f32 %v141_v28, %v59_v26  ;;  %v143_v30 = vpop.f32.mrb[1].mxu0 }
 0x106   :  { %v144_v31 = vadd.f32 %v143_v30, %v63_v27  ;;  %v212_v37 = vpop.f32.mrb[0].mxu1 }
 0x107   :  { %v261_v38 = vpop.f32.mrb[1].mxu1  ;;  %v213_v42 = vadd.f32 %v212_v37, %v67_v41 }
 0x108   :  { %v216_v32 = vmul.f32 %v144_v31, %v142_v29 }
 0x10a   :  { %217 = vmax.xlane.f32.xlu0 %v216_v32 }
 0x197   :  { %v218_v33 = vpop.xlane.xlu0 %217 }
 0x198   :  { %v219_v34 = vsub.f32 %v216_v32, %v218_v33 }
 0x19a   :  { %v220_v35 = vmul.f32 1.442695, %v219_v34 }
 0x19c   :  { %284 = vpow2.f32 %v220_v35 }
 0x1a6   :  { %v285_v36 = vpop.eup %284 }
 0x1a7   :  { %222 = vadd.xlane.f32.xlu0 %v285_v36 }
 0x234   :  { %v223_v39 = vpop.xlane.xlu0 %222 }
 0x235   :  { %286 = vrcp.f32 %v223_v39 }
 0x23f   :  { %v287_v43 = vpop.eup %286 }
 0x240   :  { %v225_v44 = vmul.f32 %v287_v43, %v285_v36 }
 0x242   :  { %v226_v45 = vmul.f32 %v225_v44, %v213_v42 }
 0x244   :  { %227 = vst [vmem:[#allocation7] sm:$0xff] %v226_v45 }
 0x245   :  { %343 = shalt.err (!%p340_p6)
}
 0x246   :  { %s344_s15 = scalar_lea.hbm %s437_s3, 128 }
 0x247   :  { %p345_p7 = scmp.ne.s32.totalorder %s437_s3, %s344_s15  ;;  %p348_p8 = scmp.lt.u32.totalorder %s344_s15, %s437_s3 }
 0x249   :  { %p350_p9 = pnand %p348_p8, %p345_p7 }
 0x24b   :  { %353 = shalt.err (!%p350_p9)
}
 0x24c   :  { %237 = dma.vmem_to_hbm [thread:$0]  %s235_s11, 128, %s437_s3, [#allocation4]  }
 0x24d   :  { %358 = dma.done.wait [#allocation4], 128  }
 0x24e   :  { %359 = vsyncadd [#allocation4], 4294967168 }
 0x24f   :  { %241 = vsyncpa [#allocation3], 1 }
 0x250   :  { %242 = vsyncpa [#allocation6], 1 }
 0x251   :  { %243 = vsyncpa [#allocation4], 1 }

</bundles_post_ra>
